<compile_context>
chip_gen: v7x
topology: tpu7x:2x2x1
jax: 0.10.0
libtpu: 0.0.40
codegen_flags: <defaults>
</compile_context>

<pallas_src>
from functools import partial

import jax
import jax.numpy as jnp
from jax import lax
from jax.experimental import pallas as pl
from jax.experimental.pallas import tpu as pltpu


# ----------------------------------------------------------------------------
# Plain-JAX glue: sampling & grouping (data-dependent gather / sort / argmax)
# ----------------------------------------------------------------------------
def square_distance(src, dst):
    # src [B, N, C], dst [B, M, C] -> [B, N, M]
    dist = -2.0 * jnp.matmul(src, jnp.swapaxes(dst, 1, 2))
    dist = dist + jnp.sum(src ** 2, axis=-1)[:, :, None]
    dist = dist + jnp.sum(dst ** 2, axis=-1)[:, None, :]
    return dist


def index_points(points, idx):
    # points [B, N, C], idx [B, ...] -> [B, ..., C]
    return jax.vmap(lambda p, i: p[i])(points, idx)


def farthest_point_sample(xyz, npoint, key):
    # xyz [B, N, 3] -> [B, npoint] int32
    B, N, _ = xyz.shape
    farthest0 = jax.random.randint(key, (B,), 0, N, dtype=jnp.int32)
    distance0 = jnp.full((B, N), 1e10, dtype=xyz.dtype)
    centroids0 = jnp.zeros((B, npoint), dtype=jnp.int32)

    def body(i, carry):
        centroids, distance, farthest = carry
        centroids = centroids.at[:, i].set(farthest)
        centroid = jnp.take_along_axis(xyz, farthest[:, None, None], axis=1)  # [B,1,3]
        dist = jnp.sum((xyz - centroid) ** 2, axis=-1)
        distance = jnp.minimum(distance, dist)
        farthest = jnp.argmax(distance, axis=-1).astype(jnp.int32)
        return centroids, distance, farthest

    centroids, _, _ = lax.fori_loop(0, npoint, body, (centroids0, distance0, farthest0))
    return centroids


def query_ball_point(radius, nsample, xyz, new_xyz):
    # xyz [B, N, 3], new_xyz [B, S, 3] -> [B, S, nsample] int32
    B, N, _ = xyz.shape
    S = new_xyz.shape[1]
    sqrdists = square_distance(new_xyz, xyz)                          # [B, S, N]
    group_idx = jnp.broadcast_to(jnp.arange(N, dtype=jnp.int32), (B, S, N))
    group_idx = jnp.where(sqrdists > radius ** 2, jnp.int32(N), group_idx)
    group_idx = jnp.sort(group_idx, axis=-1)[:, :, :nsample]
    group_first = group_idx[:, :, :1]
    group_idx = jnp.where(group_idx == N, group_first, group_idx)
    return group_idx


def sample_and_group(npoint, radius, nsample, xyz, points, key):
    # xyz [B, N, 3], points [B, N, D]
    fps_idx = farthest_point_sample(xyz, npoint, key)                 # [B, S]
    new_xyz = index_points(xyz, fps_idx)                              # [B, S, 3]
    idx = query_ball_point(radius, nsample, xyz, new_xyz)             # [B, S, ns]
    grouped_xyz = index_points(xyz, idx)                              # [B, S, ns, 3]
    grouped_xyz_norm = grouped_xyz - new_xyz[:, :, None, :]
    grouped_points = index_points(points, idx)                        # [B, S, ns, D]
    fps_points = index_points(points, fps_idx)                        # [B, S, D]
    fps_points = jnp.concatenate([new_xyz, fps_points], axis=-1)      # [B, S, 3+D]
    new_points = jnp.concatenate([grouped_xyz_norm, grouped_points], axis=-1)
    return new_xyz, new_points, grouped_xyz, fps_points


def _round_up(x, m):
    return ((x + m - 1) // m) * m


def _vmem_limit_bytes():
    """Generation-aware scoped-VMEM limit: ~3/4 of physical, 48 MiB fallback."""
    default = 48 * 1024 * 1024
    try:
        info = pltpu.get_tpu_info()
        cap = getattr(info, "vmem_capacity_bytes", None)
        if cap:
            return min(int(cap) * 3 // 4, 112 * 1024 * 1024)
    except Exception:
        pass
    return default


# ----------------------------------------------------------------------------
# Pallas kernel 1: fused 1x1-conv-MLP chain.  BN scale is pre-folded into W,
# so each layer is: bf16 matmul (f32 acc) -> +shift -> ReLU.  All layers run
# back-to-back inside the kernel; intermediates never leave VMEM/vregs.
# ----------------------------------------------------------------------------
def _fused_mlp_kernel(n_layers, x_ref, *refs):
    # refs layout: (w0, shift0, w1, shift1, ..., o_ref)
    o_ref = refs[2 * n_layers]
    compute_dtype = x_ref.dtype
    h = x_ref[...]
    for l in range(n_layers):
        w = refs[2 * l][...]
        shift = refs[2 * l + 1][...]
        h = jnp.dot(h, w, preferred_element_type=jnp.float32)
        h = jnp.maximum(h + shift, 0.0)
        if l + 1 < n_layers:
            h = h.astype(compute_dtype)           # bf16 inputs for next MXU matmul
    o_ref[...] = h.astype(o_ref.dtype)


def _pick_tile_r(R, vmem_limit):
    # Per-tile working set is tiny for these channel counts; the stage is
    # HBM / per-step-overhead bound, so use large row tiles (review: 2048-8192).
    cap = 8192 if vmem_limit >= 80 * 1024 * 1024 else 4096
    if R <= cap:
        return _round_up(max(R, 16), 16)          # 16: bf16 sublane packing
    return cap


def fused_mlp(x, layers, *, compute_dtype=jnp.bfloat16):
    """x [R, Cin] f32, layers = [(w_folded, shift), ...] -> [R, Cout_last] f32."""
    R, Cin = x.shape
    n_layers = len(layers)
    Cout = layers[-1][0].shape[1]
    vmem_limit = _vmem_limit_bytes()

    tile_r = _pick_tile_r(R, vmem_limit)
    R_pad = _round_up(R, tile_r)
    x = x.astype(compute_dtype)
    if R_pad != R:
        x = jnp.pad(x, ((0, R_pad - R), (0, 0)))  # padded rows sliced off below

    in_specs = [pl.BlockSpec((tile_r, Cin), lambda i: (i, 0))]
    args = [x]
    for (w, shift) in layers:
        cin_l, cout_l = w.shape
        in_specs.append(pl.BlockSpec((cin_l, cout_l), lambda i: (0, 0)))
        in_specs.append(pl.BlockSpec((1, cout_l), lambda i: (0, 0)))
        args.extend([w.astype(compute_dtype), shift.astype(jnp.float32)])

    out = pl.pallas_call(
        partial(_fused_mlp_kernel, n_layers),
        out_shape=jax.ShapeDtypeStruct((R_pad, Cout), jnp.float32),
        grid=(R_pad // tile_r,),
        in_specs=in_specs,
        out_specs=pl.BlockSpec((tile_r, Cout), lambda i: (i, 0)),
        compiler_params=pltpu.CompilerParams(
            dimension_semantics=("parallel",),
            vmem_limit_bytes=vmem_limit,
        ),
    )(*args)
    return out[:R]


# ----------------------------------------------------------------------------
# Pallas kernel 2: GraphAttention.
# Operands arrive as (feature || xyz) with a re-stacked to (a_h ; a_p), so one
# matmul per operand projects the concat; e = proj(center) - proj(grouped) is
# mathematically identical to (delta_p||delta_h) @ a by linearity.
# ----------------------------------------------------------------------------
def _gat_kernel(alpha, cfull_ref, gfull_ref, a_ref, o_ref):
    cfull = cfull_ref[0]          # [Ts, C]      (bf16)   C = D + 3
    gfull = gfull_ref[0]          # [Ts, ns, C]  (bf16)
    a = a_ref[...]                # [C, D]       (bf16)
    Ts, ns, C = gfull.shape
    D = a.shape[1]

    c_proj = jnp.dot(cfull, a, preferred_element_type=jnp.float32)          # [Ts, D]
    g2 = gfull.reshape(Ts * ns, C)
    g_proj = jnp.dot(g2, a, preferred_element_type=jnp.float32)             # [Ts*ns, D]
    e = c_proj[:, None, :] - g_proj.reshape(Ts, ns, D)                       # [Ts, ns, D] f32

    # LeakyReLU(alpha): max(e, alpha*e)  (valid for 0 < alpha < 1)
    e = jnp.maximum(e, alpha * e)

    # softmax over the nsample axis (dim=2 in the torch code), reciprocal
    # hoisted out of the [Ts, ns, D] product.
    m = jnp.max(e, axis=1, keepdims=True)
    p = jnp.exp(e - m)                                                       # [Ts, ns, D]
    den = jnp.sum(p, axis=1)                                                 # [Ts, D]
    gfeat = gfull[:, :, :D].astype(jnp.float32)                              # lane-0-aligned slice
    num = jnp.sum(p * gfeat, axis=1)                                         # [Ts, D]

    # TODO(synk): training-mode F.dropout(p=0.6) on attention omitted (eval semantics).
    o_ref[0] = (num * pl.reciprocal(den, approx=True)).astype(o_ref.dtype)


def _pick_tile_s(B, S, ns, C, D, budget_bytes):
    # Per-S-row VMEM use inside the GAT kernel: double-buffered bf16 gfull
    # block + ~4 live f32 [ns, D] temporaries (g_proj, e, p, gfeat).
    per_row = 2 * ns * C * 2 + 4 * ns * D * 4
    options = [S] + [c for c in (512, 256, 128, 64, 32, 16) if c < S and S % c == 0]
    tile_s = options[-1]
    for cand in options:
        if cand * per_row <= budget_bytes:
            tile_s = cand
            break
    # v7x has 2 TensorCores: make sure the 'parallel' grid has >= 2 steps.
    if B * (S // tile_s) < 2 and len(options) > 1:
        tile_s = options[1]
    return tile_s


def graph_attention(center_xyz, center_feature, grouped_xyz, grouped_feature,
                    a, alpha, *, compute_dtype=jnp.bfloat16):
    B, S, ns, D = grouped_feature.shape
    C = D + 3
    assert a.shape == (C, D), a.shape
    vmem_limit = _vmem_limit_bytes()
    tile_s = _pick_tile_s(B, S, ns, C, D, vmem_limit // 2)

    # Feature-first concat so the in-kernel gfeat slice starts at lane 0;
    # re-stack `a` accordingly: proj(x) = feat @ a[3:] + xyz @ a[:3].
    cfull = jnp.concatenate([center_feature, center_xyz], axis=-1).astype(compute_dtype)
    gfull = jnp.concatenate([grouped_feature, grouped_xyz], axis=-1).astype(compute_dtype)
    a_hp = jnp.concatenate([a[3:, :], a[:3, :]], axis=0).astype(compute_dtype)

    kernel = partial(_gat_kernel, alpha)
    return pl.pallas_call(
        kernel,
        out_shape=jax.ShapeDtypeStruct((B, S, D), jnp.float32),
        grid=(B, S // tile_s),
        in_specs=[
            pl.BlockSpec((1, tile_s, C), lambda b, s: (b, s, 0)),
            pl.BlockSpec((1, tile_s, ns, C), lambda b, s: (b, s, 0, 0)),
            pl.BlockSpec((C, D), lambda b, s: (0, 0)),
        ],
        out_specs=pl.BlockSpec((1, tile_s, D), lambda b, s: (b, s, 0)),
        compiler_params=pltpu.CompilerParams(
            dimension_semantics=("parallel", "parallel"),
            vmem_limit_bytes=vmem_limit,
        ),
    )(cfull, gfull, a_hp)


# ----------------------------------------------------------------------------
# Full forward (group_all=False path, which is the one GAT supports)
# ----------------------------------------------------------------------------
def graph_attention_conv_layer(xyz, points, params, *, npoint, radius, nsample,
                               alpha, fps_key):
    """
    xyz:    [B, 3, N]   (PyTorch channel-first)
    points: [B, D, N]
    returns new_xyz [B, 3, S], new_points [B, D_out, S]
    """
    xyz_t = jnp.transpose(xyz, (0, 2, 1))          # [B, N, 3]
    pts_t = jnp.transpose(points, (0, 2, 1))       # [B, N, D]

    new_xyz, new_points, grouped_xyz, fps_points = sample_and_group(
        npoint, radius, nsample, xyz_t, pts_t, fps_key)

    B, S, ns, Cin = new_points.shape

    # Fold the (eval-mode) BN scale into the conv weight host-side, once.
    layers = [((w * scale), shift) for (w, scale, shift) in params["mlp"]]

    # Pointwise-conv MLP on channels-last rows.  Grouped rows and center rows
    # share the same weights but are run as two calls (no host-side concat
    # copy of the full row matrix).
    grouped_feats = fused_mlp(new_points.reshape(B * S * ns, Cin), layers)
    center_feats = fused_mlp(fps_points.reshape(B * S, Cin), layers)
    D_out = grouped_feats.shape[-1]
    grouped_feature = grouped_feats.reshape(B, S, ns, D_out)
    center_feature = center_feats.reshape(B, S, D_out)

    pooled = graph_attention(new_xyz, center_feature, grouped_xyz,
                             grouped_feature, params["a"], alpha)   # [B, S, D_out]

    return jnp.transpose(new_xyz, (0, 2, 1)), jnp.transpose(pooled, (0, 2, 1))


# ----------------------------------------------------------------------------
# Deterministic parameter construction & demo
# ----------------------------------------------------------------------------
def make_params(key, in_channel, mlp_channels, eps=1e-5):
    layers = []
    last = in_channel
    for i, cout in enumerate(mlp_channels):
        kw, kb = jax.random.split(jax.random.fold_in(key, i))
        w = jax.random.normal(kw, (last, cout), jnp.float32) / jnp.sqrt(float(last))
        b = jax.random.uniform(kb, (cout,), jnp.float32, -0.1, 0.1)
        # BatchNorm2d (eval-mode, fresh init): gamma=1, beta=0, mean=0, var=1
        gamma = jnp.ones((cout,), jnp.float32)
        beta = jnp.zeros((cout,), jnp.float32)
        rmean = jnp.zeros((cout,), jnp.float32)
        rvar = jnp.ones((cout,), jnp.float32)
        s = gamma / jnp.sqrt(rvar + eps)
        scale = s.reshape(1, cout)
        shift = (beta + (b - rmean) * s).reshape(1, cout)
        layers.append((w, scale, shift))
        last = cout
    # GAT attention matrix a: (3 + D_out, D_out), xavier_uniform(gain=1.414)
    call = 3 + last
    bound = 1.414 * (6.0 / (call + last)) ** 0.5
    ka = jax.random.fold_in(key, 1000)
    a = jax.random.uniform(ka, (call, last), jnp.float32, -bound, bound)
    return {"mlp": layers, "a": a}


if __name__ == "__main__":
    key = jax.random.PRNGKey(0)
    k_xyz, k_pts, k_fps, k_params = jax.random.split(key, 4)

    B, N, D_in = 2, 64, 4
    npoint, radius, nsample = 8, 0.4, 8
    mlp = [16, 32]
    in_channel = 3 + D_in          # grouped/fps features carry (xyz || point feats)

    xyz = jax.random.normal(k_xyz, (B, 3, N), dtype=jnp.float32)
    points = jax.random.normal(k_pts, (B, D_in, N), dtype=jnp.float32)

    params = make_params(k_params, in_channel, mlp)

    new_xyz, new_points = graph_attention_conv_layer(
        xyz, points, params,
        npoint=npoint, radius=radius, nsample=nsample, alpha=0.2, fps_key=k_fps)

    (new_xyz, new_points) = jax.block_until_ready((new_xyz, new_points))

    assert new_xyz.shape == (B, 3, npoint), new_xyz.shape
    assert new_points.shape == (B, mlp[-1], npoint), new_points.shape
    assert bool(jnp.all(jnp.isfinite(new_points)))
    print("KERNEL_OK")
</pallas_src>

<mosaic_0001>
module attributes {stable_mosaic.version = 11 : i64} {
  func.func @_fused_mlp_kernel(%arg0: i32, %arg1: memref<128x7xbf16, #tpu.memory_space<vmem>>, %arg2: memref<7x16xbf16, #tpu.memory_space<vmem>>, %arg3: memref<1x16xf32, #tpu.memory_space<vmem>>, %arg4: memref<16x32xbf16, #tpu.memory_space<vmem>>, %arg5: memref<1x32xf32, #tpu.memory_space<vmem>>, %arg6: memref<128x32xf32, #tpu.memory_space<vmem>>) attributes {dimension_semantics = [#tpu.dimension_semantics<parallel>], iteration_bounds = array<i64: 1>, scalar_prefetch = 0 : i64, scratch_operands = 0 : i64, tpu.core_type = #tpu.core_type<tc>, window_params = [{transform_indices = @transform_0, window_bounds = array<i64: 128, 7>}, {pipeline_mode = #tpu.pipeline_mode<synchronous>, transform_indices = @transform_1, window_bounds = array<i64: 7, 16>}, {pipeline_mode = #tpu.pipeline_mode<synchronous>, transform_indices = @transform_2, window_bounds = array<i64: 1, 16>}, {pipeline_mode = #tpu.pipeline_mode<synchronous>, transform_indices = @transform_3, window_bounds = array<i64: 16, 32>}, {pipeline_mode = #tpu.pipeline_mode<synchronous>, transform_indices = @transform_4, window_bounds = array<i64: 1, 32>}, {transform_indices = @transform_5, window_bounds = array<i64: 128, 32>}]} {
    %c0 = arith.constant 0 : index
    %c0_0 = arith.constant 0 : index
    %0 = vector.load %arg1[%c0, %c0_0] : memref<128x7xbf16, #tpu.memory_space<vmem>>, vector<128x7xbf16>
    %c0_1 = arith.constant 0 : index
    %c0_2 = arith.constant 0 : index
    %1 = vector.load %arg2[%c0_1, %c0_2] : memref<7x16xbf16, #tpu.memory_space<vmem>>, vector<7x16xbf16>
    %c0_3 = arith.constant 0 : index
    %c0_4 = arith.constant 0 : index
    %2 = vector.load %arg3[%c0_3, %c0_4] : memref<1x16xf32, #tpu.memory_space<vmem>>, vector<1x16xf32>
    %cst = arith.constant dense<0.000000e+00> : vector<128x16xf32>
    %3 = tpu.matmul %0, %1, %cst {dimension_numbers = #tpu.dot_dimension_numbers<[1], [0], [0], [1], [0, 0, 1, 1], [], []>} : vector<128x7xbf16>, vector<7x16xbf16>, vector<128x16xf32> -> vector<128x16xf32>
    %4 = vector.broadcast %2 : vector<1x16xf32> to vector<128x16xf32>
    %5 = arith.addf %3, %4 : vector<128x16xf32>
    %cst_5 = arith.constant 0.000000e+00 : f32
    %6 = vector.broadcast %cst_5 : f32 to vector<128x16xf32>
    %7 = arith.maximumf %5, %6 : vector<128x16xf32>
    %8 = arith.truncf %7 : vector<128x16xf32> to vector<128x16xbf16>
    %c0_6 = arith.constant 0 : index
    %c0_7 = arith.constant 0 : index
    %9 = vector.load %arg4[%c0_6, %c0_7] : memref<16x32xbf16, #tpu.memory_space<vmem>>, vector<16x32xbf16>
    %c0_8 = arith.constant 0 : index
    %c0_9 = arith.constant 0 : index
    %10 = vector.load %arg5[%c0_8, %c0_9] : memref<1x32xf32, #tpu.memory_space<vmem>>, vector<1x32xf32>
    %cst_10 = arith.constant dense<0.000000e+00> : vector<128x32xf32>
    %11 = tpu.matmul %8, %9, %cst_10 {dimension_numbers = #tpu.dot_dimension_numbers<[1], [0], [0], [1], [0, 0, 1, 1], [], []>} : vector<128x16xbf16>, vector<16x32xbf16>, vector<128x32xf32> -> vector<128x32xf32>
    %12 = vector.broadcast %10 : vector<1x32xf32> to vector<128x32xf32>
    %13 = arith.addf %11, %12 : vector<128x32xf32>
    %cst_11 = arith.constant 0.000000e+00 : f32
    %14 = vector.broadcast %cst_11 : f32 to vector<128x32xf32>
    %15 = arith.maximumf %13, %14 : vector<128x32xf32>
    %c0_12 = arith.constant 0 : index
    %c0_13 = arith.constant 0 : index
    %16 = vector.load %arg6[%c0_12, %c0_13] : memref<128x32xf32, #tpu.memory_space<vmem>>, vector<128x32xf32>
    tpu.vector_store %arg6[%c0_12, %c0_13], %15 {strides = array<i32>} : memref<128x32xf32, #tpu.memory_space<vmem>>, vector<128x32xf32>,
    return
  }
  func.func @transform_0(%arg0: i32) -> (i32, i32) {
    %c0_i32 = arith.constant 0 : i32
    %c0_i32_0 = arith.constant 0 : i32
    return %arg0, %c0_i32 : i32, i32
  }
  func.func @transform_1(%arg0: i32) -> (i32, i32) {
    %c0_i32 = arith.constant 0 : i32
    %c0_i32_0 = arith.constant 0 : i32
    %c0_i32_1 = arith.constant 0 : i32
    return %c0_i32, %c0_i32_0 : i32, i32
  }
  func.func @transform_2(%arg0: i32) -> (i32, i32) {
    %c0_i32 = arith.constant 0 : i32
    %c0_i32_0 = arith.constant 0 : i32
    %c0_i32_1 = arith.constant 0 : i32
    return %c0_i32, %c0_i32_0 : i32, i32
  }
  func.func @transform_3(%arg0: i32) -> (i32, i32) {
    %c0_i32 = arith.constant 0 : i32
    %c0_i32_0 = arith.constant 0 : i32
    %c0_i32_1 = arith.constant 0 : i32
    return %c0_i32, %c0_i32_0 : i32, i32
  }
  func.func @transform_4(%arg0: i32) -> (i32, i32) {
    %c0_i32 = arith.constant 0 : i32
    %c0_i32_0 = arith.constant 0 : i32
    %c0_i32_1 = arith.constant 0 : i32
    return %c0_i32, %c0_i32_0 : i32, i32
  }
  func.func @transform_5(%arg0: i32) -> (i32, i32) {
    %c0_i32 = arith.constant 0 : i32
    %c0_i32_0 = arith.constant 0 : i32
    return %arg0, %c0_i32 : i32, i32
  }
}

</mosaic_0001>

<bundles_post_ra>
// kernel: tpu_custom_call.1
= control target key start
LH: loop header
LB: loop body
LE: loop exit
PB: predicated region body
PF: predicated region fallthrough
CT: control target
= control target key end

     0   :  { %vm110_vm0 = vcmask 1042432   ;;  %vm111_vm1 = vcmask 1043456   ;;  %vm85_vm2 = vcmask 56320   ;;  %v503_v1 = vmov 65535   ;;  %s650_s1 = inlined_call_operand.vmem [shape: bf16[7,16], index: 1, kind: input, shape index: {}]   ;;  %s651_s0 = inlined_call_operand.vmem [shape: bf16[128,7], index: 0, kind: input, shape index: {}]   ;;  %s652_s3 = inlined_call_operand.vmem [shape: bf16[16,32], index: 3, kind: input, shape index: {}]   ;;  %s653_s2 = inlined_call_operand.vmem [shape: f32[1,16], index: 2, kind: input, shape index: {}]   ;;  %s654_s4 = inlined_call_operand.vmem [shape: f32[1,32], index: 4, kind: input, shape index: {}]   ;;  %s655_s5 = inlined_call_operand.vmem [shape: f32[128,32], index: 5, kind: output, shape index: {}]  }
   0x1   :  { %v37_v0 = vld [vmem:[%s650_s1] sm:$0xf]  ;;  %v112_v2 = vsel %vm110_vm0, 4294967295, %v503_v1  ;;  %v495_v6 = vld [vmem:[%s651_s0 + $0x8] sm:$0xff]   ;;  %v496_v7 = vld [vmem:[%s651_s0 + $0x10] sm:$0xff]   ;;  %vm253_vm3 = vcmask 130048  }
   0x2   :  { %v494_v3 = vld [vmem:[%s651_s0] sm:$0xff]   ;;  %v113_v4 = vsel %vm111_vm1, %v112_v2, 0  ;;  %v497_v8 = vld [vmem:[%s651_s0 + $0x18] sm:$0xff]   ;;  %v499_v10 = vld [vmem:[%s651_s0 + $0x28] sm:$0xff]   ;;  %vm391_vm4 = vcmask 261120  }
   0x3   :  { %v115_v5 = vand.u32 %v113_v4, %v37_v0  ;;  %459 = vmatprep.mubr.msk.bf16.mxu0 %vm85_vm2, %v494_v3  ;;  %v498_v9 = vld [vmem:[%s651_s0 + $0x20] sm:$0xff]   ;;  %v500_v11 = vld [vmem:[%s651_s0 + $0x30] sm:$0xff]   ;;  %v501_v12 = vld [vmem:[%s651_s0 + $0x38] sm:$0xff]  }
   0x4   :  { %v502_v13 = vld [vmem:[%s652_s3] sm:$0xff]  }
   0x5   :  { %457 = vmatprep.subr.bf16.mxu0 %v115_v5  ;;  %475 = vmatprep.subr.bf16.mxu1 %v502_v13  ;;  %v412_v14 = vld [vmem:[%s653_s2] ss:$0 sm:$0xff] }
   0x6   :  { %458 = vmatpush3.bf16.msra.mxu0 %v115_v5  ;;  %476 = vmatpush3.bf16.msra.mxu1 %v502_v13 }
   0x9   :  { %460 = vmatmul.mubr.msk.bf16.vlgmr.msra.gmra.mrb[0].mxu0 %vm85_vm2, %v495_v6 }
   0xa   :  { %463 = vmatprep.mubr.msk.bf16.mxu0 %vm85_vm2, %v496_v7  ;;  %v429_v7 = vld [vmem:[%s654_s4] ss:$0 sm:$0xff] }
  0x11   :  { %464 = vmatmul.mubr.msk.bf16.gmra.mrb[4].mxu0 %vm85_vm2, %v497_v8 }
  0x12   :  { %467 = vmatprep.mubr.msk.bf16.mxu0 %vm85_vm2, %v498_v9 }
  0x19   :  { %468 = vmatmul.mubr.msk.bf16.gmra.mrb[8].mxu0 %vm85_vm2, %v499_v10 }
  0x1a   :  { %471 = vmatprep.mubr.msk.bf16.mxu0 %vm85_vm2, %v500_v11 }
  0x21   :  { %472 = vmatmul.mubr.msk.bf16.gmra.mrb[12].mxu0 %vm85_vm2, %v501_v12 }
  0xdc   :  { %v461_v15 = vpop.f32.mrb[0].mxu0 }
  0xdd   :  { %v160_v16 = vadd.f32 %v461_v15, %v412_v14  ;;  %v151_v17 = vpop.f32.mrb[1].mxu0 }
  0xde   :  { %v152_v18 = vadd.f32 %v412_v14, %v151_v17  ;;  %v462_v19 = vpop.f32.mrb[2].mxu0 }
  0xdf   :  { %v163_v20 = vadd.f32 %v462_v19, %v412_v14  ;;  %v154_v21 = vpop.f32.mrb[3].mxu0  ;;  %v216_v23 = vmax.f32 %v160_v16, 0.0 }
  0xe0   :  { %v155_v22 = vadd.f32 %v412_v14, %v154_v21  ;;  %v214_v25 = vmax.f32 %v152_v18, 0.0 }
  0xe1   :  { %v217_v24 = vmax.f32 %v163_v20, 0.0 }
  0xe2   :  { %v215_v26 = vmax.f32 %v155_v22, 0.0 }
  0xe3   :  { %v231_v27 = vpack.c.bf16 %v217_v24, %v216_v23 }
  0xe4   :  { %v465_v28 = vpop.f32.mrb[4].mxu0  ;;  %v230_v29 = vpack.c.bf16 %v215_v26, %v214_v25 }
  0xe5   :  { %v176_v30 = vadd.f32 %v465_v28, %v412_v14  ;;  %v167_v31 = vpop.f32.mrb[5].mxu0 }
  0xe6   :  { %v168_v32 = vadd.f32 %v412_v14, %v167_v31  ;;  %v466_v33 = vpop.f32.mrb[6].mxu0  ;;  %477 = vmatprep.mubr.msk.bf16.mxu1 %vm253_vm3, %v230_v29 }
  0xe7   :  { %v179_v34 = vadd.f32 %v466_v33, %v412_v14  ;;  %v170_v35 = vpop.f32.mrb[7].mxu0  ;;  %478 = vmatmul.mubr.msk.bf16.vlgmr.msra.gmra.mrb[0].mxu1 %vm253_vm3, %v231_v27  ;;  %v220_v37 = vmax.f32 %v176_v30, 0.0 }
  0xe8   :  { %v171_v36 = vadd.f32 %v412_v14, %v170_v35  ;;  %v218_v39 = vmax.f32 %v168_v32, 0.0 }
  0xe9   :  { %v221_v38 = vmax.f32 %v179_v34, 0.0 }
  0xea   :  { %v219_v40 = vmax.f32 %v171_v36, 0.0 }
  0xeb   :  { %v233_v41 = vpack.c.bf16 %v221_v38, %v220_v37 }
  0xec   :  { %v232_v42 = vpack.c.bf16 %v219_v40, %v218_v39  ;;  %v469_v43 = vpop.f32.mrb[8].mxu0 }
  0xed   :  { %v192_v44 = vadd.f32 %v469_v43, %v412_v14  ;;  %v183_v45 = vpop.f32.mrb[9].mxu0 }
  0xee   :  { %v184_v46 = vadd.f32 %v412_v14, %v183_v45  ;;  %v470_v47 = vpop.f32.mrb[10].mxu0  ;;  %481 = vmatprep.mubr.msk.bf16.mxu1 %vm253_vm3, %v232_v42 }
  0xef   :  { %v195_v48 = vadd.f32 %v470_v47, %v412_v14  ;;  %v186_v49 = vpop.f32.mrb[11].mxu0  ;;  %482 = vmatmul.mubr.msk.bf16.gmra.mrb[4].mxu1 %vm253_vm3, %v233_v41  ;;  %v224_v51 = vmax.f32 %v192_v44, 0.0 }
  0xf0   :  { %v187_v50 = vadd.f32 %v412_v14, %v186_v49  ;;  %v222_v53 = vmax.f32 %v184_v46, 0.0 }
  0xf1   :  { %v225_v52 = vmax.f32 %v195_v48, 0.0 }
  0xf2   :  { %v223_v54 = vmax.f32 %v187_v50, 0.0 }
  0xf3   :  { %v235_v55 = vpack.c.bf16 %v225_v52, %v224_v51 }
  0xf4   :  { %v234_v56 = vpack.c.bf16 %v223_v54, %v222_v53  ;;  %v473_v57 = vpop.f32.mrb[12].mxu0 }
  0xf5   :  { %v208_v58 = vadd.f32 %v473_v57, %v412_v14  ;;  %v199_v59 = vpop.f32.mrb[13].mxu0 }
  0xf6   :  { %v200_v60 = vadd.f32 %v412_v14, %v199_v59  ;;  %v474_v61 = vpop.f32.mrb[14].mxu0  ;;  %485 = vmatprep.mubr.msk.bf16.mxu1 %vm253_vm3, %v234_v56 }
  0xf7   :  { %v211_v62 = vadd.f32 %v474_v61, %v412_v14  ;;  %v202_v63 = vpop.f32.mrb[15].mxu0  ;;  %486 = vmatmul.mubr.msk.bf16.gmra.mrb[8].mxu1 %vm253_vm3, %v235_v55  ;;  %v228_v1 = vmax.f32 %v208_v58, 0.0 }
  0xf8   :  { %v203_v0 = vadd.f32 %v412_v14, %v202_v63  ;;  %v226_v3 = vmax.f32 %v200_v60, 0.0 }
  0xf9   :  { %v229_v2 = vmax.f32 %v211_v62, 0.0 }
  0xfa   :  { %v227_v4 = vmax.f32 %v203_v0, 0.0 }
  0xfb   :  { %v237_v5 = vpack.c.bf16 %v229_v2, %v228_v1 }
  0xfc   :  { %v236_v6 = vpack.c.bf16 %v227_v4, %v226_v3 }
  0xfe   :  { %489 = vmatprep.mubr.msk.bf16.mxu1 %vm253_vm3, %v236_v6 }
  0xff   :  { %490 = vmatmul.mubr.msk.bf16.gmra.mrb[12].mxu1 %vm253_vm3, %v237_v5 }
 0x1ba   :  { %v479_v8 = vpop.f32.mrb[0].mxu1 }
 0x1bb   :  { %v321_v9 = vadd.f32 %v479_v8, %v429_v7  ;;  %v312_v10 = vpop.f32.mrb[1].mxu1 }
 0x1bc   :  { %v313_v11 = vadd.f32 %v429_v7, %v312_v10  ;;  %v480_v12 = vpop.f32.mrb[2].mxu1 }
 0x1bd   :  { %v377_v13 = vmax.f32 %v321_v9, 0.0  ;;  %v324_v14 = vadd.f32 %v480_v12, %v429_v7  ;;  %v315_v15 = vpop.f32.mrb[3].mxu1 }
 0x1be   :  { %v375_v16 = vmax.f32 %v313_v11, 0.0  ;;  %v316_v17 = vadd.f32 %v429_v7, %v315_v15 }
 0x1bf   :  { %394 = vst.msk [vmem:[%s655_s5 + $0x10] sm:$0xff] %vm391_vm4, %v377_v13  ;;  %v378_v18 = vmax.f32 %v324_v14, 0.0 }
 0x1c0   :  { %392 = vst.msk [vmem:[%s655_s5] sm:$0xff] %vm391_vm4, %v375_v16  ;;  %v376_v19 = vmax.f32 %v316_v17, 0.0 }
 0x1c1   :  { %395 = vst.msk [vmem:[%s655_s5 + $0x18] sm:$0xff] %vm391_vm4, %v378_v18 }
 0x1c2   :  { %393 = vst.msk [vmem:[%s655_s5 + $0x8] sm:$0xff] %vm391_vm4, %v376_v19  ;;  %v483_v20 = vpop.f32.mrb[4].mxu1 }
 0x1c3   :  { %v337_v21 = vadd.f32 %v483_v20, %v429_v7  ;;  %v328_v22 = vpop.f32.mrb[5].mxu1 }
 0x1c4   :  { %v329_v23 = vadd.f32 %v429_v7, %v328_v22  ;;  %v484_v24 = vpop.f32.mrb[6].mxu1 }
 0x1c5   :  { %v381_v25 = vmax.f32 %v337_v21, 0.0  ;;  %v340_v26 = vadd.f32 %v484_v24, %v429_v7  ;;  %v331_v27 = vpop.f32.mrb[7].mxu1 }
 0x1c6   :  { %v379_v28 = vmax.f32 %v329_v23, 0.0  ;;  %v332_v29 = vadd.f32 %v429_v7, %v331_v27 }
 0x1c7   :  { %398 = vst.msk [vmem:[%s655_s5 + $0x30] sm:$0xff] %vm391_vm4, %v381_v25  ;;  %v382_v30 = vmax.f32 %v340_v26, 0.0 }
 0x1c8   :  { %396 = vst.msk [vmem:[%s655_s5 + $0x20] sm:$0xff] %vm391_vm4, %v379_v28  ;;  %v380_v31 = vmax.f32 %v332_v29, 0.0 }
 0x1c9   :  { %399 = vst.msk [vmem:[%s655_s5 + $0x38] sm:$0xff] %vm391_vm4, %v382_v30 }
 0x1ca   :  { %397 = vst.msk [vmem:[%s655_s5 + $0x28] sm:$0xff] %vm391_vm4, %v380_v31  ;;  %v487_v32 = vpop.f32.mrb[8].mxu1 }
 0x1cb   :  { %v353_v33 = vadd.f32 %v487_v32, %v429_v7  ;;  %v344_v34 = vpop.f32.mrb[9].mxu1 }
 0x1cc   :  { %v345_v35 = vadd.f32 %v429_v7, %v344_v34  ;;  %v488_v36 = vpop.f32.mrb[10].mxu1 }
 0x1cd   :  { %v385_v37 = vmax.f32 %v353_v33, 0.0  ;;  %v356_v38 = vadd.f32 %v488_v36, %v429_v7  ;;  %v347_v39 = vpop.f32.mrb[11].mxu1 }
 0x1ce   :  { %v383_v40 = vmax.f32 %v345_v35, 0.0  ;;  %v348_v41 = vadd.f32 %v429_v7, %v347_v39 }
 0x1cf   :  { %402 = vst.msk [vmem:[%s655_s5 + $0x50] sm:$0xff] %vm391_vm4, %v385_v37  ;;  %v386_v42 = vmax.f32 %v356_v38, 0.0 }
 0x1d0   :  { %400 = vst.msk [vmem:[%s655_s5 + $0x40] sm:$0xff] %vm391_vm4, %v383_v40  ;;  %v384_v43 = vmax.f32 %v348_v41, 0.0 }
 0x1d1   :  { %403 = vst.msk [vmem:[%s655_s5 + $0x58] sm:$0xff] %vm391_vm4, %v386_v42 }
 0x1d2   :  { %401 = vst.msk [vmem:[%s655_s5 + $0x48] sm:$0xff] %vm391_vm4, %v384_v43  ;;  %v491_v44 = vpop.f32.mrb[12].mxu1 }
 0x1d3   :  { %v369_v45 = vadd.f32 %v491_v44, %v429_v7  ;;  %v360_v46 = vpop.f32.mrb[13].mxu1 }
 0x1d4   :  { %v361_v47 = vadd.f32 %v429_v7, %v360_v46  ;;  %v492_v48 = vpop.f32.mrb[14].mxu1 }
 0x1d5   :  { %v389_v49 = vmax.f32 %v369_v45, 0.0  ;;  %v372_v50 = vadd.f32 %v492_v48, %v429_v7  ;;  %v363_v51 = vpop.f32.mrb[15].mxu1 }
 0x1d6   :  { %v387_v52 = vmax.f32 %v361_v47, 0.0  ;;  %v364_v53 = vadd.f32 %v429_v7, %v363_v51 }
 0x1d7   :  { %406 = vst.msk [vmem:[%s655_s5 + $0x70] sm:$0xff] %vm391_vm4, %v389_v49  ;;  %v390_v54 = vmax.f32 %v372_v50, 0.0 }
 0x1d8   :  { %404 = vst.msk [vmem:[%s655_s5 + $0x60] sm:$0xff] %vm391_vm4, %v387_v52  ;;  %v388_v55 = vmax.f32 %v364_v53, 0.0 }
 0x1d9   :  { %407 = vst.msk [vmem:[%s655_s5 + $0x78] sm:$0xff] %vm391_vm4, %v390_v54 }
 0x1da   :  { %405 = vst.msk [vmem:[%s655_s5 + $0x68] sm:$0xff] %vm391_vm4, %v388_v55 }

</bundles_post_ra>
